<compile_context>
chip_gen: v5e
topology: v5e:2x2
jax: 0.10.0
libtpu: 0.0.40
codegen_flags: <defaults>
</compile_context>

<pallas_src>
import jax
import jax.numpy as jnp
from jax import lax
from jax.experimental import pallas as pl
from jax.experimental.pallas import tpu as pltpu


def _encoder_mlp_kernel(x_ref,
                        w0_ref, b0_ref, w1_ref, b1_ref,
                        w2_ref, b2_ref, w3_ref, b3_ref,
                        o_ref):
    """4-layer MLP for one batch tile.

    x_ref: (bt, state)   batch-major, as the module's caller provides it.
    o_ref: (noise, bt)   feature-major (lane axis = batch) -> lane-dense stores.
    Weights: PyTorch (out, in) layout; biases: (out, 1) f32 columns.
    """
    f32 = jnp.float32
    cd = w0_ref.dtype                       # compute dtype chosen at prepare time
    x = x_ref[...].astype(cd)               # (bt, state)

    # Layer 0: contract the feature axes of W (out,in) and x (bt,in) directly.
    # Mosaic folds the transpose into MXU operand loading (no XLU transpose).
    h = lax.dot_general(w0_ref[...], x, (((1,), (1,)), ((), ())),
                        preferred_element_type=f32)          # (hidden, bt)
    h = jnp.maximum(h + b0_ref[...], 0.0)

    h = jnp.dot(w1_ref[...], h.astype(cd), preferred_element_type=f32)
    h = jnp.maximum(h + b1_ref[...], 0.0)

    h = jnp.dot(w2_ref[...], h.astype(cd), preferred_element_type=f32)
    h = jnp.maximum(h + b2_ref[...], 0.0)

    out = jnp.dot(w3_ref[...], h.astype(cd), preferred_element_type=f32)
    o_ref[...] = (out + b3_ref[...]).astype(o_ref.dtype)     # (noise, bt)


def init_params(key, state_size, hidden_size, noise_size):
    """Deterministic synthetic init (PyTorch-Linear-style uniform bounds).
    Canonical layout: W (out, in), b (out,)."""
    def linear(k, fan_in, fan_out):
        kw, kb = jax.random.split(k)
        bound = 1.0 / jnp.sqrt(fan_in)
        w = jax.random.uniform(kw, (fan_out, fan_in), jnp.float32, -bound, bound)
        b = jax.random.uniform(kb, (fan_out,), jnp.float32, -bound, bound)
        return w, b

    ks = jax.random.split(key, 4)
    sizes = [(state_size, hidden_size), (hidden_size, hidden_size),
             (hidden_size, hidden_size), (hidden_size, noise_size)]
    params = {}
    for i, (k, (fi, fo)) in enumerate(zip(ks, sizes)):
        params[f"w{i}"], params[f"b{i}"] = linear(k, fi, fo)
    return params


def prepare_params(params, compute_dtype=jnp.float32):
    """One-time prep (call OUTSIDE the per-step path): cast weights to the MXU
    compute dtype (bf16 recommended on v6e/v7x, f32 on v5e), biases -> (out,1) f32."""
    prep = {}
    for i in range(4):
        prep[f"w{i}"] = params[f"w{i}"].astype(compute_dtype)
        prep[f"b{i}"] = params[f"b{i}"].reshape(-1, 1).astype(jnp.float32)
    return prep


def encoder_reference(x, params):
    """Pure-JAX forward with PyTorch semantics (canonical params)."""
    h = x
    for i in range(3):
        h = jnp.maximum(h @ params[f"w{i}"].T + params[f"b{i}"], 0.0)
    return h @ params["w3"].T + params["b3"]


def _forward_xla(x, prep):
    """Tiny-batch fallback: plain XLA, same math, on prepared params."""
    cd = prep["w0"].dtype
    h = x
    for i in range(3):
        h = jnp.maximum(
            jnp.dot(h.astype(cd), prep[f"w{i}"].T,
                    preferred_element_type=jnp.float32) + prep[f"b{i}"][:, 0],
            0.0)
    out = (jnp.dot(h.astype(cd), prep["w3"].T,
                   preferred_element_type=jnp.float32) + prep["b3"][:, 0])
    return out.astype(x.dtype)


def _choose_batch_tile(B, requested):
    """Multiple of 128 (lane-dense output), clamped so the grid has >=2 steps
    whenever B allows it (keeps both v7x TensorCores busy; no-op on v5e/v6e)."""
    requested = max(128, (requested // 128) * 128)
    half = ((B // 2) // 128) * 128
    if half >= 128:
        return min(requested, half)
    # Small B: either a single 128-wide tile or the whole batch (full-dim block).
    return min(requested, B)


def encoder_forward(x, prepared, *, batch_tile=2048, min_pallas_batch=256,
                    out_feature_major=False):
    """Encoder.forward.

    x:        (B, state_size) float32  (module layout)
    prepared: output of prepare_params()
    Returns (B, noise_size); or (noise_size, B) if out_feature_major=True,
    which skips the final transpose HBM pass for feature-major consumers.
    """
    B, state_size = x.shape
    noise_size = prepared["w3"].shape[0]

    if B < min_pallas_batch:
        out = _forward_xla(x, prepared)
        return out.T if out_feature_major else out

    bt = _choose_batch_tile(B, batch_tile)
    grid = (pl.cdiv(B, bt),)          # no jnp.pad: ragged last block is clipped

    full = lambda a: pl.BlockSpec(a.shape, lambda i: (0, 0))
    in_specs = [pl.BlockSpec((bt, state_size), lambda i: (i, 0))]   # x tile
    for k in range(4):
        in_specs += [full(prepared[f"w{k}"]), full(prepared[f"b{k}"])]
    # Transposed output block: lane axis = batch -> lane-dense, unmasked stores.
    out_spec = pl.BlockSpec((noise_size, bt), lambda i: (0, i))

    out_fm = pl.pallas_call(
        _encoder_mlp_kernel,
        out_shape=jax.ShapeDtypeStruct((noise_size, B), x.dtype),
        grid_spec=pltpu.PrefetchScalarGridSpec(
            num_scalar_prefetch=0,
            grid=grid,
            in_specs=in_specs,
            out_specs=out_spec,
        ),
        compiler_params=pltpu.CompilerParams(
            dimension_semantics=("parallel",)),
    )(x,
      prepared["w0"], prepared["b0"], prepared["w1"], prepared["b1"],
      prepared["w2"], prepared["b2"], prepared["w3"], prepared["b3"])

    return out_fm if out_feature_major else out_fm.T


if __name__ == "__main__":
    # cfg['general'] = {state_size: 16, hidden_size: 32, noise_size: 8}
    state_size, hidden_size, noise_size = 16, 32, 8

    key = jax.random.PRNGKey(0)
    kp, kx, kx2, kx3 = jax.random.split(key, 4)
    params = init_params(kp, state_size, hidden_size, noise_size)
    prep_f32 = prepare_params(params, jnp.float32)

    # Pallas path: B=1024 -> batch_tile clamped to 512, grid of 2 "parallel"
    # steps (both v7x TensorCores busy; harmless on single-TC v5e/v6e).
    B = 1024
    x = jax.random.normal(kx, (B, state_size), jnp.float32)
    ref = encoder_reference(x, params)

    out = jax.block_until_ready(encoder_forward(x, prep_f32))
    assert out.shape == (B, noise_size)
    assert jnp.allclose(out, ref, atol=1e-5, rtol=1e-5)

    # Feature-major output path (skips the final transpose HBM pass).
    out_fm = jax.block_until_ready(
        encoder_forward(x, prep_f32, out_feature_major=True))
    assert out_fm.shape == (noise_size, B)
    assert jnp.allclose(out_fm.T, ref, atol=1e-5, rtol=1e-5)

    # Ragged batch, no jnp.pad: grid = cdiv(1000, 384) = 3, last block clipped.
    Br = 1000
    xr = jax.random.normal(kx2, (Br, state_size), jnp.float32)
    out_r = jax.block_until_ready(encoder_forward(xr, prep_f32))
    assert out_r.shape == (Br, noise_size)
    assert jnp.allclose(out_r, encoder_reference(xr, params),
                        atol=1e-5, rtol=1e-5)

    # bf16 MXU operands (recommended default on v6e/v7x), f32 accumulation.
    prep_bf16 = prepare_params(params, jnp.bfloat16)
    out_bf16 = jax.block_until_ready(encoder_forward(x, prep_bf16))
    assert out_bf16.shape == (B, noise_size)
    assert jnp.allclose(out_bf16, ref, atol=5e-2, rtol=5e-2)

    # Tiny batch (module-scale, B=8): dispatches to plain XLA, same math.
    xs = jax.random.normal(kx3, (8, state_size), jnp.float32)
    out_s = jax.block_until_ready(encoder_forward(xs, prep_f32))
    assert jnp.allclose(out_s, encoder_reference(xs, params),
                        atol=1e-5, rtol=1e-5)

    print("KERNEL_OK")
</pallas_src>

<mosaic_0001>
module attributes {stable_mosaic.version = 11 : i64} {
  func.func @_encoder_mlp_kernel(%arg0: i32, %arg1: memref<512x16xf32, #tpu.memory_space<vmem>>, %arg2: memref<32x16xf32, #tpu.memory_space<vmem>>, %arg3: memref<32x1xf32, #tpu.memory_space<vmem>>, %arg4: memref<32x32xf32, #tpu.memory_space<vmem>>, %arg5: memref<32x1xf32, #tpu.memory_space<vmem>>, %arg6: memref<32x32xf32, #tpu.memory_space<vmem>>, %arg7: memref<32x1xf32, #tpu.memory_space<vmem>>, %arg8: memref<8x32xf32, #tpu.memory_space<vmem>>, %arg9: memref<8x1xf32, #tpu.memory_space<vmem>>, %arg10: memref<8x512xf32, #tpu.memory_space<vmem>>) attributes {dimension_semantics = [#tpu.dimension_semantics<parallel>], iteration_bounds = array<i64: 2>, scalar_prefetch = 0 : i64, scratch_operands = 0 : i64, tpu.core_type = #tpu.core_type<tc>, window_params = [{transform_indices = @transform_0, window_bounds = array<i64: 512, 16>}, {pipeline_mode = #tpu.pipeline_mode<synchronous>, transform_indices = @transform_1, window_bounds = array<i64: 32, 16>}, {pipeline_mode = #tpu.pipeline_mode<synchronous>, transform_indices = @transform_2, window_bounds = array<i64: 32, 1>}, {pipeline_mode = #tpu.pipeline_mode<synchronous>, transform_indices = @transform_3, window_bounds = array<i64: 32, 32>}, {pipeline_mode = #tpu.pipeline_mode<synchronous>, transform_indices = @transform_4, window_bounds = array<i64: 32, 1>}, {pipeline_mode = #tpu.pipeline_mode<synchronous>, transform_indices = @transform_5, window_bounds = array<i64: 32, 32>}, {pipeline_mode = #tpu.pipeline_mode<synchronous>, transform_indices = @transform_6, window_bounds = array<i64: 32, 1>}, {pipeline_mode = #tpu.pipeline_mode<synchronous>, transform_indices = @transform_7, window_bounds = array<i64: 8, 32>}, {pipeline_mode = #tpu.pipeline_mode<synchronous>, transform_indices = @transform_8, window_bounds = array<i64: 8, 1>}, {transform_indices = @transform_9, window_bounds = array<i64: 8, 512>}]} {
    %c0 = arith.constant 0 : index
    %c0_0 = arith.constant 0 : index
    %0 = vector.load %arg1[%c0, %c0_0] : memref<512x16xf32, #tpu.memory_space<vmem>>, vector<512x16xf32>
    %c0_1 = arith.constant 0 : index
    %c0_2 = arith.constant 0 : index
    %1 = vector.load %arg2[%c0_1, %c0_2] : memref<32x16xf32, #tpu.memory_space<vmem>>, vector<32x16xf32>
    %cst = arith.constant dense<0.000000e+00> : vector<32x512xf32>
    %2 = tpu.matmul %1, %0, %cst {dimension_numbers = #tpu.dot_dimension_numbers<[1], [1], [0], [0], [0, 0, 1, 0], [], []>} : vector<32x16xf32>, vector<512x16xf32>, vector<32x512xf32> -> vector<32x512xf32>
    %c0_3 = arith.constant 0 : index
    %c0_4 = arith.constant 0 : index
    %3 = vector.load %arg3[%c0_3, %c0_4] : memref<32x1xf32, #tpu.memory_space<vmem>>, vector<32x1xf32>
    %4 = vector.broadcast %3 : vector<32x1xf32> to vector<32x512xf32>
    %5 = arith.addf %2, %4 : vector<32x512xf32>
    %cst_5 = arith.constant 0.000000e+00 : f32
    %6 = vector.broadcast %cst_5 : f32 to vector<32x512xf32>
    %7 = arith.maximumf %5, %6 : vector<32x512xf32>
    %c0_6 = arith.constant 0 : index
    %c0_7 = arith.constant 0 : index
    %8 = vector.load %arg4[%c0_6, %c0_7] : memref<32x32xf32, #tpu.memory_space<vmem>>, vector<32x32xf32>
    %cst_8 = arith.constant dense<0.000000e+00> : vector<32x512xf32>
    %9 = tpu.matmul %8, %7, %cst_8 {dimension_numbers = #tpu.dot_dimension_numbers<[1], [0], [0], [1], [0, 0, 1, 1], [], []>} : vector<32x32xf32>, vector<32x512xf32>, vector<32x512xf32> -> vector<32x512xf32>
    %c0_9 = arith.constant 0 : index
    %c0_10 = arith.constant 0 : index
    %10 = vector.load %arg5[%c0_9, %c0_10] : memref<32x1xf32, #tpu.memory_space<vmem>>, vector<32x1xf32>
    %11 = vector.broadcast %10 : vector<32x1xf32> to vector<32x512xf32>
    %12 = arith.addf %9, %11 : vector<32x512xf32>
    %cst_11 = arith.constant 0.000000e+00 : f32
    %13 = vector.broadcast %cst_11 : f32 to vector<32x512xf32>
    %14 = arith.maximumf %12, %13 : vector<32x512xf32>
    %c0_12 = arith.constant 0 : index
    %c0_13 = arith.constant 0 : index
    %15 = vector.load %arg6[%c0_12, %c0_13] : memref<32x32xf32, #tpu.memory_space<vmem>>, vector<32x32xf32>
    %cst_14 = arith.constant dense<0.000000e+00> : vector<32x512xf32>
    %16 = tpu.matmul %15, %14, %cst_14 {dimension_numbers = #tpu.dot_dimension_numbers<[1], [0], [0], [1], [0, 0, 1, 1], [], []>} : vector<32x32xf32>, vector<32x512xf32>, vector<32x512xf32> -> vector<32x512xf32>
    %c0_15 = arith.constant 0 : index
    %c0_16 = arith.constant 0 : index
    %17 = vector.load %arg7[%c0_15, %c0_16] : memref<32x1xf32, #tpu.memory_space<vmem>>, vector<32x1xf32>
    %18 = vector.broadcast %17 : vector<32x1xf32> to vector<32x512xf32>
    %19 = arith.addf %16, %18 : vector<32x512xf32>
    %cst_17 = arith.constant 0.000000e+00 : f32
    %20 = vector.broadcast %cst_17 : f32 to vector<32x512xf32>
    %21 = arith.maximumf %19, %20 : vector<32x512xf32>
    %c0_18 = arith.constant 0 : index
    %c0_19 = arith.constant 0 : index
    %22 = vector.load %arg8[%c0_18, %c0_19] : memref<8x32xf32, #tpu.memory_space<vmem>>, vector<8x32xf32>
    %cst_20 = arith.constant dense<0.000000e+00> : vector<8x512xf32>
    %23 = tpu.matmul %22, %21, %cst_20 {dimension_numbers = #tpu.dot_dimension_numbers<[1], [0], [0], [1], [0, 0, 1, 1], [], []>} : vector<8x32xf32>, vector<32x512xf32>, vector<8x512xf32> -> vector<8x512xf32>
    %c0_21 = arith.constant 0 : index
    %c0_22 = arith.constant 0 : index
    %24 = vector.load %arg9[%c0_21, %c0_22] : memref<8x1xf32, #tpu.memory_space<vmem>>, vector<8x1xf32>
    %25 = vector.broadcast %24 : vector<8x1xf32> to vector<8x512xf32>
    %26 = arith.addf %23, %25 : vector<8x512xf32>
    %c0_23 = arith.constant 0 : index
    %c0_24 = arith.constant 0 : index
    %27 = vector.load %arg10[%c0_23, %c0_24] : memref<8x512xf32, #tpu.memory_space<vmem>>, vector<8x512xf32>
    tpu.vector_store %arg10[%c0_23, %c0_24], %26 {strides = array<i32>} : memref<8x512xf32, #tpu.memory_space<vmem>>, vector<8x512xf32>,
    return
  }
  func.func @transform_0(%arg0: i32) -> (i32, i32) {
    %c0_i32 = arith.constant 0 : i32
    %c0_i32_0 = arith.constant 0 : i32
    return %arg0, %c0_i32 : i32, i32
  }
  func.func @transform_1(%arg0: i32) -> (i32, i32) {
    %c0_i32 = arith.constant 0 : i32
    %c0_i32_0 = arith.constant 0 : i32
    %c0_i32_1 = arith.constant 0 : i32
    return %c0_i32, %c0_i32_0 : i32, i32
  }
  func.func @transform_2(%arg0: i32) -> (i32, i32) {
    %c0_i32 = arith.constant 0 : i32
    %c0_i32_0 = arith.constant 0 : i32
    %c0_i32_1 = arith.constant 0 : i32
    return %c0_i32, %c0_i32_0 : i32, i32
  }
  func.func @transform_3(%arg0: i32) -> (i32, i32) {
    %c0_i32 = arith.constant 0 : i32
    %c0_i32_0 = arith.constant 0 : i32
    %c0_i32_1 = arith.constant 0 : i32
    return %c0_i32, %c0_i32_0 : i32, i32
  }
  func.func @transform_4(%arg0: i32) -> (i32, i32) {
    %c0_i32 = arith.constant 0 : i32
    %c0_i32_0 = arith.constant 0 : i32
    %c0_i32_1 = arith.constant 0 : i32
    return %c0_i32, %c0_i32_0 : i32, i32
  }
  func.func @transform_5(%arg0: i32) -> (i32, i32) {
    %c0_i32 = arith.constant 0 : i32
    %c0_i32_0 = arith.constant 0 : i32
    %c0_i32_1 = arith.constant 0 : i32
    return %c0_i32, %c0_i32_0 : i32, i32
  }
  func.func @transform_6(%arg0: i32) -> (i32, i32) {
    %c0_i32 = arith.constant 0 : i32
    %c0_i32_0 = arith.constant 0 : i32
    %c0_i32_1 = arith.constant 0 : i32
    return %c0_i32, %c0_i32_0 : i32, i32
  }
  func.func @transform_7(%arg0: i32) -> (i32, i32) {
    %c0_i32 = arith.constant 0 : i32
    %c0_i32_0 = arith.constant 0 : i32
    %c0_i32_1 = arith.constant 0 : i32
    return %c0_i32, %c0_i32_0 : i32, i32
  }
  func.func @transform_8(%arg0: i32) -> (i32, i32) {
    %c0_i32 = arith.constant 0 : i32
    %c0_i32_0 = arith.constant 0 : i32
    %c0_i32_1 = arith.constant 0 : i32
    return %c0_i32, %c0_i32_0 : i32, i32
  }
  func.func @transform_9(%arg0: i32) -> (i32, i32) {
    %c0_i32 = arith.constant 0 : i32
    %c0_i32_0 = arith.constant 0 : i32
    return %c0_i32, %arg0 : i32, i32
  }
}

</mosaic_0001>

<bundles_post_ra>
// kernel: tpu_custom_call.1
= control target key start
LH: loop header
LB: loop body
LE: loop exit
PB: predicated region body
PF: predicated region fallthrough
CT: control target
= control target key end

     0   :  { %14 = vsyncpa [#allocation3], 0  ;;  %s1909_s0 = inlined_call_operand.vmem [shape: f32[1024,16], index: 0, kind: input, shape index: {}]   ;;  %s1910_s1 = inlined_call_operand.vmem [shape: f32[32,16], index: 1, kind: input, shape index: {}]   ;;  %s1911_s2 = inlined_call_operand.vmem [shape: f32[32,1], index: 2, kind: input, shape index: {}]   ;;  %s1912_s3 = inlined_call_operand.vmem [shape: f32[32,32], index: 3, kind: input, shape index: {}]   ;;  %s1913_s4 = inlined_call_operand.vmem [shape: f32[32,1], index: 4, kind: input, shape index: {}]   ;;  %s1914_s5 = inlined_call_operand.vmem [shape: f32[32,32], index: 5, kind: input, shape index: {}]   ;;  %s1915_s6 = inlined_call_operand.vmem [shape: f32[32,1], index: 6, kind: input, shape index: {}]   ;;  %s1916_s7 = inlined_call_operand.vmem [shape: f32[8,32], index: 7, kind: input, shape index: {}]   ;;  %s1917_s8 = inlined_call_operand.vmem [shape: f32[8,1], index: 8, kind: input, shape index: {}]   ;;  %s1918_s9 = inlined_call_operand.hbm [shape: f32[8,1024], index: 9, kind: output, shape index: {}]  }
   0x1   :  { %16 = vsyncpa [#allocation3 + $0x1], 0  ;;  %s1565_s30 = smov 0   ;;  %s1567_s10 = smov 0  }
   0x2   :  { %s1569_s11 = smov 0   ;;  %s1571_s12 = smov 0  }
   0x3 LB: > { %s1586_s13 = sadd.s32 4294967295, %s1512_s12   ;;  %s1278_s14 = sadd.s32 4294967294, %s1512_s12   ;;  %s1512_s12 = sphi %s1571_s12, %s1924_s12   ;;  %s1508_s11 = sphi %s1569_s11, %s1923_s11   ;;  %s1504_s10 = sphi %s1567_s10, %s1922_s10   ;;  %s1500_s30 = sphi %s1565_s30, %s1921_s30  }
   0x4   : > { %s1590_s15 = sadd.s32 1, %s1512_s12   ;;  %s223_s16 = sadd.s32 1, %s1508_s11 }
   0x5   : > { %s220_s17 = ssub.s32 %s1512_s12, %s1590_s15  ;;  %p233_p0 = scmp.ne.s32.totalorder %s1508_s11, %s1504_s10 }
   0x6   : > { %p221_p1 = scmp.eq.s32.totalorder %s220_s17, 0  ;;  %p234_p2 = scmp.eq.s32.totalorder %s1586_s13, 1 }
   0x7   : > { %p239_p3 = scmp.ne.s32.totalorder %s1504_s10, %s1500_s30  ;;  %p240_p4 = scmp.eq.s32.totalorder %s1278_s14, 1 }
   0x8   : > { %s1601_s18 = scalar_select %p221_p1, %s1508_s11, %s223_s16  }
   0x9   : > { %p1603_p5 = por %p234_p2, %p233_p0  ;;  %p1607_p6 = por %p240_p4, %p239_p3 }
   0xa   : > { %p1281_p7 = scmp.ge.s32.totalorder %s1512_s12, 1  ;;  %p291_p8 = scmp.lt.s32.totalorder %s1512_s12, 3 }
   0xc   : > { %p292_p9 = pnand %p1281_p7, %p291_p8 }
   0xd   : > { %s1283_s21 = sshll.u32 (!%p292_p9), %s1586_s13, 6  ;;  %s324_s16 = sand.u32 (!%p292_p9), 1, %s1504_s10  }
   0xe   : > { %295 = sbr.rel (%p292_p9) target bundleno = 727 (0x2d7), region = 56  ;;  %p328_p10 = scmp.lt.s32.totalorder (!%p292_p9), %s1283_s21, 127 }
   0xf   : > { %s1203_s28 = scalar_lea.sflag (!%p292_p9), [#allocation3], %s324_s16 }
  0x13   : > { %s1926_s21 = smov (!%p328_p10, %s1283_s21), 127  ;;  %vm426_vm0 = vcmask 130048   ;;  %v405_v36 = vld [vmem:[%s1911_s2 + $0x18] sm:$0xff]  ;;  %v1514_v41 = vmov 0   ;;  %v403_v46 = vld [vmem:[%s1911_s2 + $0x8] sm:$0xff]  ;;  %v404_v47 = vld [vmem:[%s1911_s2 + $0x10] sm:$0xff] }
  0x14   : > { %s1284_s22 = sshll.u32 %s1926_s21, 3  ;;  %1447 = vset.pattern.permute.xlu0 %v1514_v41  ;;  %1448 = vset.pattern.permute.xlu1 %v1514_v41  ;;  %v402_v56 = vld [vmem:[%s1911_s2] sm:$0xff]  ;;  %v768_v57 = vld [vmem:[%s1913_s4 + $0x8] sm:$0xff]  ;;  %vm791_vm1 = vcmask 261120   ;;  %s1406_s21 = sshll.u32 %s1586_s13, 5 }
  0x15   : > { %s1617_s25 = scalar_lea.vmem %s1909_s0, %s1284_s22  ;;  %423 = vperm.xlu0 %1447, %v405_v36   ;;  %1449 = vset.pattern.permute.xlu2 %v1514_v41  ;;  %s1214_s24 = scalar_lea.hbm %s1918_s9, %s1406_s21 }
  0x16   : > { %v349_v0 = vld [vmem:[%s1617_s25 + $0x78] sm:$0xff]  ;;  %v348_v4 = vld [vmem:[%s1617_s25 + $0x70] sm:$0xff]  ;;  %v347_v8 = vld [vmem:[%s1617_s25 + $0x68] sm:$0xff]  ;;  %413 = vperm.xlu1 %1448, %v403_v46   ;;  %s1218_s27 = sshll.u32 %s1214_s24, 4  ;;  %s1470_s21 = scalar_lea.hbm %s1918_s9, 64  ;;  %s1219_s27 = int_to_ptr.hbm [resolvable:$true] %s1218_s27 }
  0x17   : > { %v365_v1 = vld [vmem:[%s1617_s25 + $0xf8] sm:$0xff]  ;;  %1285 = vmatpush.xpose.msk.msra.mxu0 %vm426_vm0, %v349_v0  ;;  %v364_v5 = vld [vmem:[%s1617_s25 + $0xf0] sm:$0xff]  ;;  %v363_v9 = vld [vmem:[%s1617_s25 + $0xe8] sm:$0xff]  ;;  %s1464_s29 = sshra.s32 %s1219_s27, 4  ;;  %s1465_s29 = int_to_ptr.hbm [resolvable:$true] %s1464_s29 }
  0x18   : > { %v381_v2 = vld [vmem:[%s1617_s25 + $0x178] sm:$0xff]  ;;  %1305 = vmatpush.xpose.msk.msra.mxu1 %vm426_vm0, %v365_v1  ;;  %v380_v6 = vld [vmem:[%s1617_s25 + $0x170] sm:$0xff]  ;;  %v379_v10 = vld [vmem:[%s1617_s25 + $0x168] sm:$0xff]  ;;  %s1466_s14 = scalar_lea.hbm %s1465_s29, 32  ;;  %p1471_p0 = scmp.lt.s32.totalorder %s1465_s29, %s1918_s9 }
  0x19   : > { %v397_v3 = vld [vmem:[%s1617_s25 + $0x1f8] sm:$0xff]  ;;  %1325 = vmatpush.xpose.msk.msra.mxu2 %vm426_vm0, %v381_v2  ;;  %v396_v7 = vld [vmem:[%s1617_s25 + $0x1f0] sm:$0xff]  ;;  %v395_v11 = vld [vmem:[%s1617_s25 + $0x1e8] sm:$0xff]  ;;  %p1467_p11 = scmp.ne.s32.totalorder %s1465_s29, %s1466_s14  ;;  %p1472_p1 = scmp.lt.s32.totalorder %s1470_s21, %s1466_s14 }
  0x1a   : > { %1345 = vmatpush.xpose.msk.msra.mxu3 %vm426_vm0, %v397_v3  ;;  %v346_v12 = vld [vmem:[%s1617_s25 + $0x60] sm:$0xff]  ;;  %v345_v16 = vld [vmem:[%s1617_s25 + $0x58] sm:$0xff]  ;;  %v344_v20 = vld [vmem:[%s1617_s25 + $0x50] sm:$0xff] }
  0x1b   : > { %1286 = vmatpush.xpose.msk.msra.mxu0 %vm426_vm0, %v348_v4  ;;  %v362_v13 = vld [vmem:[%s1617_s25 + $0xe0] sm:$0xff]  ;;  %v361_v17 = vld [vmem:[%s1617_s25 + $0xd8] sm:$0xff]  ;;  %v360_v21 = vld [vmem:[%s1617_s25 + $0xd0] sm:$0xff]  ;;  %p1468_p12 = pnand %p1467_p11, %p1603_p5  ;;  %p1473_p2 = por %p1472_p1, %p1471_p0 }
  0x1c   : > { %1306 = vmatpush.xpose.msk.msra.mxu1 %vm426_vm0, %v364_v5  ;;  %v378_v14 = vld [vmem:[%s1617_s25 + $0x160] sm:$0xff]  ;;  %v377_v18 = vld [vmem:[%s1617_s25 + $0x158] sm:$0xff]  ;;  %v376_v22 = vld [vmem:[%s1617_s25 + $0x150] sm:$0xff] }
  0x1d   : > { %1326 = vmatpush.xpose.msk.msra.mxu2 %vm426_vm0, %v380_v6  ;;  %v394_v15 = vld [vmem:[%s1617_s25 + $0x1e0] sm:$0xff]  ;;  %v393_v19 = vld [vmem:[%s1617_s25 + $0x1d8] sm:$0xff]  ;;  %v392_v23 = vld [vmem:[%s1617_s25 + $0x1d0] sm:$0xff]  ;;  %418 = vperm.xlu0 %1447, %v404_v47   ;;  %p1469_p13 = pneg %p1468_p12 }
  0x1e   : > { %1346 = vmatpush.xpose.msk.msra.mxu3 %vm426_vm0, %v396_v7  ;;  %v343_v24 = vld [vmem:[%s1617_s25 + $0x48] sm:$0xff]  ;;  %v342_v28 = vld [vmem:[%s1617_s25 + $0x40] sm:$0xff]  ;;  %v341_v32 = vld [vmem:[%s1617_s25 + $0x38] sm:$0xff]  ;;  %408 = vperm.xlu1 %1448, %v402_v56  }
  0x1f   : > { %1287 = vmatpush.xpose.msk.msra.mxu0 %vm426_vm0, %v347_v8  ;;  %v359_v25 = vld [vmem:[%s1617_s25 + $0xc8] sm:$0xff]  ;;  %v358_v29 = vld [vmem:[%s1617_s25 + $0xc0] sm:$0xff]  ;;  %v357_v33 = vld [vmem:[%s1617_s25 + $0xb8] sm:$0xff]  ;;  %p1474_p3 = pnand %p1473_p2, %p1469_p13 }
  0x20   : > { %1307 = vmatpush.xpose.msk.msra.mxu1 %vm426_vm0, %v363_v9  ;;  %v375_v26 = vld [vmem:[%s1617_s25 + $0x148] sm:$0xff]  ;;  %v374_v30 = vld [vmem:[%s1617_s25 + $0x140] sm:$0xff]  ;;  %v373_v34 = vld [vmem:[%s1617_s25 + $0x138] sm:$0xff] }
  0x21   : > { %1327 = vmatpush.xpose.msk.msra.mxu2 %vm426_vm0, %v379_v10  ;;  %v391_v27 = vld [vmem:[%s1617_s25 + $0x1c8] sm:$0xff]  ;;  %v390_v31 = vld [vmem:[%s1617_s25 + $0x1c0] sm:$0xff]  ;;  %v389_v35 = vld [vmem:[%s1617_s25 + $0x1b8] sm:$0xff] }
  0x22   : > { %1347 = vmatpush.xpose.msk.msra.mxu3 %vm426_vm0, %v395_v11  ;;  %v340_v37 = vld [vmem:[%s1617_s25 + $0x30] sm:$0xff]  ;;  %v339_v42 = vld [vmem:[%s1617_s25 + $0x28] sm:$0xff]  ;;  %v338_v48 = vld [vmem:[%s1617_s25 + $0x20] sm:$0xff] }
  0x23   : > { %1288 = vmatpush.xpose.msk.msra.mxu0 %vm426_vm0, %v346_v12  ;;  %v356_v38 = vld [vmem:[%s1617_s25 + $0xb0] sm:$0xff]  ;;  %v355_v43 = vld [vmem:[%s1617_s25 + $0xa8] sm:$0xff]  ;;  %v354_v49 = vld [vmem:[%s1617_s25 + $0xa0] sm:$0xff] }
  0x24   : > { %1308 = vmatpush.xpose.msk.msra.mxu1 %vm426_vm0, %v362_v13  ;;  %v372_v39 = vld [vmem:[%s1617_s25 + $0x130] sm:$0xff]  ;;  %v371_v44 = vld [vmem:[%s1617_s25 + $0x128] sm:$0xff]  ;;  %v370_v50 = vld [vmem:[%s1617_s25 + $0x120] sm:$0xff] }
  0x25   : > { %1328 = vmatpush.xpose.msk.msra.mxu2 %vm426_vm0, %v378_v14  ;;  %v388_v40 = vld [vmem:[%s1617_s25 + $0x1b0] sm:$0xff]  ;;  %v387_v45 = vld [vmem:[%s1617_s25 + $0x1a8] sm:$0xff]  ;;  %v386_v51 = vld [vmem:[%s1617_s25 + $0x1a0] sm:$0xff]  ;;  %778 = vperm.xlu0 %1447, %v768_v57  }
  0x26   : > { %1348 = vmatpush.xpose.msk.msra.mxu3 %vm426_vm0, %v394_v15  ;;  %v337_v52 = vld [vmem:[%s1617_s25 + $0x18] sm:$0xff]  ;;  %v336_v58 = vld [vmem:[%s1617_s25 + $0x10] sm:$0xff]  ;;  %v335_v62 = vld [vmem:[%s1617_s25 + $0x8] sm:$0xff] }
  0x27   : > { %1289 = vmatpush.xpose.msk.msra.mxu0 %vm426_vm0, %v345_v16  ;;  %v353_v53 = vld [vmem:[%s1617_s25 + $0x98] sm:$0xff]  ;;  %v352_v59 = vld [vmem:[%s1617_s25 + $0x90] sm:$0xff]  ;;  %v351_v63 = vld [vmem:[%s1617_s25 + $0x88] sm:$0xff] }
  0x28   : > { %1309 = vmatpush.xpose.msk.msra.mxu1 %vm426_vm0, %v361_v17  ;;  %v369_v54 = vld [vmem:[%s1617_s25 + $0x118] sm:$0xff]  ;;  %v368_v60 = vld [vmem:[%s1617_s25 + $0x110] sm:$0xff]  ;;  %v367_v0 = vld [vmem:[%s1617_s25 + $0x108] sm:$0xff] }
  0x29   : > { %1329 = vmatpush.xpose.msk.msra.mxu2 %vm426_vm0, %v377_v18  ;;  %v385_v55 = vld [vmem:[%s1617_s25 + $0x198] sm:$0xff]  ;;  %v384_v61 = vld [vmem:[%s1617_s25 + $0x190] sm:$0xff]  ;;  %v383_v1 = vld [vmem:[%s1617_s25 + $0x188] sm:$0xff] }
  0x2a   : > { %1349 = vmatpush.xpose.msk.msra.mxu3 %vm426_vm0, %v393_v19  ;;  %v942_v2 = vld [vmem:[%s1915_s6 + $0x10] sm:$0xff]  ;;  %v767_v3 = vld [vmem:[%s1913_s4] sm:$0xff]  ;;  %v941_v9 = vld [vmem:[%s1915_s6 + $0x8] sm:$0xff] }
  0x2b   : > { %1290 = vmatpush.xpose.msk.msra.mxu0 %vm426_vm0, %v344_v20  ;;  %v334_v4 = vld [vmem:[%s1617_s25] sm:$0xff]  ;;  %773 = vperm.xlu1 %1448, %v767_v3   ;;  %v399_v11 = vld [vmem:[%s1910_s1 + $0x8] sm:$0xff]  ;;  %v400_v12 = vld [vmem:[%s1910_s1 + $0x10] sm:$0xff] }
  0x2c   : > { %1310 = vmatpush.xpose.msk.msra.mxu1 %vm426_vm0, %v360_v21  ;;  %v350_v5 = vld [vmem:[%s1617_s25 + $0x80] sm:$0xff]  ;;  %v401_v13 = vld [vmem:[%s1910_s1 + $0x18] sm:$0xff] }
  0x2d   : > { %1330 = vmatpush.xpose.msk.msra.mxu2 %vm426_vm0, %v376_v22  ;;  %v366_v6 = vld [vmem:[%s1617_s25 + $0x100] sm:$0xff]  ;;  %956 = vperm.xlu0 %1447, %v942_v2  }
  0x2e   : > { %1350 = vmatpush.xpose.msk.msra.mxu3 %vm426_vm0, %v392_v23  ;;  %v382_v7 = vld [vmem:[%s1617_s25 + $0x180] sm:$0xff]  ;;  %s1282_s25 = sshll.u32 %s324_s16, 5 }
  0x2f   : > { %1291 = vmatpush.xpose.msk.msra.mxu0 %vm426_vm0, %v343_v24  ;;  %v398_v8 = vld [vmem:[%s1910_s1] sm:$0xff]  ;;  %s326_s17 = scalar_lea.vmem [#allocation2], %s1282_s25 }
  0x30   : > { %1311 = vmatpush.xpose.msk.msra.mxu1 %vm426_vm0, %v359_v25  ;;  %v1109_v10 = vld [vmem:[%s1917_s8] sm:$0xff]  ;;  %s1216_s26 = sshll.u32 %s326_s17, 4  ;;  %s1217_s26 = int_to_ptr.vmem [resolvable:$true] %s1216_s26 }
  0x31   : > { %1331 = vmatpush.xpose.msk.msra.mxu2 %vm426_vm0, %v375_v26 }
  0x32   : > { %1351 = vmatpush.xpose.msk.msra.mxu3 %vm426_vm0, %v391_v27 }
  0x33   : > { %1292 = vmatpush.xpose.msk.msra.mxu0 %vm426_vm0, %v342_v28  ;;  %951 = vperm.xlu1 %1448, %v941_v9   ;;  %v940_v9 = vld [vmem:[%s1915_s6] sm:$0xff] }
  0x34   : > { %1312 = vmatpush.xpose.msk.msra.mxu1 %vm426_vm0, %v358_v29 }
  0x35   : > { %1332 = vmatpush.xpose.msk.msra.mxu2 %vm426_vm0, %v374_v30  ;;  %1112 = vperm.xlu0 %1447, %v1109_v10  }
  0x36   : > { %1352 = vmatpush.xpose.msk.msra.mxu3 %vm426_vm0, %v390_v31 }
  0x37   : > { %1293 = vmatpush.xpose.msk.msra.mxu0 %vm426_vm0, %v341_v32 }
  0x38   : > { %1313 = vmatpush.xpose.msk.msra.mxu1 %vm426_vm0, %v357_v33 }
  0x39   : > { %1333 = vmatpush.xpose.msk.msra.mxu2 %vm426_vm0, %v373_v34 }
  0x3a   : > { %1353 = vmatpush.xpose.msk.msra.mxu3 %vm426_vm0, %v389_v35 }
  0x3b   : > { %1294 = vmatpush.xpose.msk.msra.mxu0 %vm426_vm0, %v340_v37 }
  0x3c   : > { %1314 = vmatpush.xpose.msk.msra.mxu1 %vm426_vm0, %v356_v38 }
  0x3d   : > { %1334 = vmatpush.xpose.msk.msra.mxu2 %vm426_vm0, %v372_v39 }
  0x3e   : > { %1354 = vmatpush.xpose.msk.msra.mxu3 %vm426_vm0, %v388_v40 }
  0x3f   : > { %1295 = vmatpush.xpose.msk.msra.mxu0 %vm426_vm0, %v339_v42 }
  0x40   : > { %1315 = vmatpush.xpose.msk.msra.mxu1 %vm426_vm0, %v355_v43 }
  0x41   : > { %1335 = vmatpush.xpose.msk.msra.mxu2 %vm426_vm0, %v371_v44 }
  0x42   : > { %1355 = vmatpush.xpose.msk.msra.mxu3 %vm426_vm0, %v387_v45 }
  0x43   : > { %1296 = vmatpush.xpose.msk.msra.mxu0 %vm426_vm0, %v338_v48 }
  0x44   : > { %1316 = vmatpush.xpose.msk.msra.mxu1 %vm426_vm0, %v354_v49 }
  0x45   : > { %1336 = vmatpush.xpose.msk.msra.mxu2 %vm426_vm0, %v370_v50 }
  0x46   : > { %1356 = vmatpush.xpose.msk.msra.mxu3 %vm426_vm0, %v386_v51 }
  0x47   : > { %1297 = vmatpush.xpose.msk.msra.mxu0 %vm426_vm0, %v337_v52 }
  0x48   : > { %1317 = vmatpush.xpose.msk.msra.mxu1 %vm426_vm0, %v353_v53 }
  0x49   : > { %1337 = vmatpush.xpose.msk.msra.mxu2 %vm426_vm0, %v369_v54 }
  0x4a   : > { %1357 = vmatpush.xpose.msk.msra.mxu3 %vm426_vm0, %v385_v55 }
  0x4b   : > { %1298 = vmatpush.xpose.msk.msra.mxu0 %vm426_vm0, %v336_v58  ;;  %v763_v58 = vld [vmem:[%s1912_s3] sm:$0xff] }
  0x4c   : > { %1318 = vmatpush.xpose.msk.msra.mxu1 %vm426_vm0, %v352_v59 }
  0x4d   : > { %1338 = vmatpush.xpose.msk.msra.mxu2 %vm426_vm0, %v368_v60 }
  0x4e   : > { %1358 = vmatpush.xpose.msk.msra.mxu3 %vm426_vm0, %v384_v61 }
  0x4f   : > { %1299 = vmatpush.xpose.msk.msra.mxu0 %vm426_vm0, %v335_v62 }
  0x50   : > { %1319 = vmatpush.xpose.msk.msra.mxu1 %vm426_vm0, %v351_v63  ;;  %v770_v63 = vld [vmem:[%s1913_s4 + $0x18] sm:$0xff] }
  0x51   : > { %1339 = vmatpush.xpose.msk.msra.mxu2 %vm426_vm0, %v367_v0  ;;  %788 = vperm.xlu2 %1449, %v770_v63  }
  0x52   : > { %1359 = vmatpush.xpose.msk.msra.mxu3 %vm426_vm0, %v383_v1 }
  0x53   : > { %1300 = vmatpush.xpose.msk.msra.mxu0 %vm426_vm0, %v334_v4  ;;  %v764_v4 = vld [vmem:[%s1912_s3 + $0x8] sm:$0xff] }
  0x54   : > { %1320 = vmatpush.xpose.msk.msra.mxu1 %vm426_vm0, %v350_v5  ;;  %v769_v5 = vld [vmem:[%s1913_s4 + $0x10] sm:$0xff] }
  0x55   : > { %1340 = vmatpush.xpose.msk.msra.mxu2 %vm426_vm0, %v366_v6  ;;  %v765_v6 = vld [vmem:[%s1912_s3 + $0x10] sm:$0xff] }
  0x56   : > { %1360 = vmatpush.xpose.msk.msra.mxu3 %vm426_vm0, %v382_v7  ;;  %1301 = vmatmul.msk.f32.vlgmr.msra.gmra.mxu0 %vm426_vm0, %v398_v8  ;;  %v943_v7 = vld [vmem:[%s1915_s6 + $0x18] sm:$0xff] }
  0x57   : > { %1321 = vmatmul.msk.f32.vlgmr.msra.gmra.mxu1 %vm426_vm0, %v398_v8 }
  0x58   : > { %1341 = vmatmul.msk.f32.vlgmr.msra.gmra.mxu2 %vm426_vm0, %v398_v8 }
  0x59   : > { %1361 = vmatmul.msk.f32.vlgmr.msra.gmra.mxu3 %vm426_vm0, %v398_v8  ;;  %783 = vperm.xlu2 %1449, %v769_v5   ;;  %v766_v8 = vld [vmem:[%s1912_s3 + $0x18] sm:$0xff] }
  0x5e   : > { %1302 = vmatmul.msk.f32.gmra.mxu0 %vm426_vm0, %v399_v11 }
  0x5f   : > { %1322 = vmatmul.msk.f32.gmra.mxu1 %vm426_vm0, %v399_v11 }
  0x60   : > { %1342 = vmatmul.msk.f32.gmra.mxu2 %vm426_vm0, %v399_v11 }
  0x61   : > { %1362 = vmatmul.msk.f32.gmra.mxu3 %vm426_vm0, %v399_v11  ;;  %961 = vperm.xlu2 %1449, %v943_v7  }
  0x66   : > { %1303 = vmatmul.msk.f32.gmra.mxu0 %vm426_vm0, %v400_v12 }
  0x67   : > { %1323 = vmatmul.msk.f32.gmra.mxu1 %vm426_vm0, %v400_v12 }
  0x68   : > { %1343 = vmatmul.msk.f32.gmra.mxu2 %vm426_vm0, %v400_v12 }
  0x69   : > { %1363 = vmatmul.msk.f32.gmra.mxu3 %vm426_vm0, %v400_v12  ;;  %946 = vperm.xlu2 %1449, %v940_v9  }
  0x6e   : > { %1304 = vmatmul.msk.f32.gmra.mxu0 %vm426_vm0, %v401_v13 }
  0x6f   : > { %1324 = vmatmul.msk.f32.gmra.mxu1 %vm426_vm0, %v401_v13 }
  0x70   : > { %1344 = vmatmul.msk.f32.gmra.mxu2 %vm426_vm0, %v401_v13 }
  0x71   : > { %1364 = vmatmul.msk.f32.gmra.mxu3 %vm426_vm0, %v401_v13 }
  0x87   : > { %v424_v20 = vpop.permute.xlu0 %423 }
  0x88   : > { %v414_v25 = vpop.permute.xlu1 %413 }
  0x8f   : > { %v419_v26 = vpop.permute.xlu0 %418 }
  0x90   : > { %v409_v37 = vpop.permute.xlu1 %408 }
  0xd3   : > { %v648_v14 = vpop.f32.mrf.mxu0 }
  0xd4   : > { %v677_v15 = vpop.f32.mrf.mxu1  ;;  %v649_v40 = vadd.f32 %v648_v14, %v409_v37  ;;  %v789_v14 = vpop.permute.xlu2 %788 }
  0xd5   : > { %v678_v41 = vadd.f32 %v677_v15, %v409_v37 }
  0xd6   : > { %v747_v52 = vmax.f32 %v649_v40, 0.0 }
  0xd7   : > { %v748_v53 = vmax.f32 %v678_v41, 0.0 }
  0xdb   : > { %v706_v16 = vpop.f32.mrf.mxu2  ;;  %v651_v18 = vpop.f32.mrf.mxu0 }
  0xdc   : > { %v735_v17 = vpop.f32.mrf.mxu3  ;;  %v680_v19 = vpop.f32.mrf.mxu1  ;;  %v652_v29 = vadd.f32 %v651_v18, %v414_v25  ;;  %v707_v59 = vadd.f32 %v706_v16, %v409_v37 }
  0xdd   : > { %v681_v30 = vadd.f32 %v680_v19, %v414_v25  ;;  %v736_v60 = vadd.f32 %v735_v17, %v409_v37 }
  0xde   : > { %v751_v42 = vmax.f32 %v652_v29, 0.0  ;;  %v749_v2 = vmax.f32 %v707_v59, 0.0  ;;  %v937_v59 = vld [vmem:[%s1914_s5 + $0x8] sm:$0xff] }
  0xdf   : > { %v752_v43 = vmax.f32 %v681_v30, 0.0  ;;  %v750_v3 = vmax.f32 %v736_v60, 0.0 }
  0xe3   : > { %v709_v21 = vpop.f32.mrf.mxu2  ;;  %v654_v23 = vpop.f32.mrf.mxu0 }
  0xe4   : > { %v738_v22 = vpop.f32.mrf.mxu3  ;;  %v683_v24 = vpop.f32.mrf.mxu1  ;;  %v655_v33 = vadd.f32 %v654_v23, %v419_v26  ;;  %v710_v54 = vadd.f32 %v709_v21, %v414_v25 }
  0xe5   : > { %v684_v34 = vadd.f32 %v683_v24, %v419_v26  ;;  %v739_v55 = vadd.f32 %v738_v22, %v414_v25  ;;  %v784_v21 = vpop.permute.xlu2 %783 }
  0xe6   : > { %v755_v44 = vmax.f32 %v655_v33, 0.0  ;;  %v753_v0 = vmax.f32 %v710_v54, 0.0 }
  0xe7   : > { %v756_v45 = vmax.f32 %v684_v34, 0.0  ;;  %v754_v1 = vmax.f32 %v739_v55, 0.0 }
  0xeb   : > { %v712_v27 = vpop.f32.mrf.mxu2  ;;  %v657_v31 = vpop.f32.mrf.mxu0 }
  0xec   : > { %v741_v28 = vpop.f32.mrf.mxu3  ;;  %v686_v32 = vpop.f32.mrf.mxu1  ;;  %v658_v35 = vadd.f32 %v657_v31, %v424_v20  ;;  %v713_v48 = vadd.f32 %v712_v27, %v419_v26 }
  0xed   : > { %v687_v36 = vadd.f32 %v686_v32, %v424_v20  ;;  %v742_v49 = vadd.f32 %v741_v28, %v419_v26  ;;  %v779_v26 = vpop.permute.xlu0 %778  ;;  %v774_v31 = vpop.permute.xlu1 %773 }
  0xee   : > { %v759_v38 = vmax.f32 %v658_v35, 0.0  ;;  %v757_v61 = vmax.f32 %v713_v48, 0.0 }
  0xef   : > { %v760_v39 = vmax.f32 %v687_v36, 0.0  ;;  %v758_v62 = vmax.f32 %v742_v49, 0.0 }
  0xf0   : > { %816 = vmatpush.msrb.mxu0 %v759_v38 }
  0xf1   : > { %845 = vmatpush.msrb.mxu1 %v760_v39 }
  0xf2   : > { %817 = vmatpush.msrb.mxu0 %v755_v44  ;;  %v936_v44 = vld [vmem:[%s1914_s5] sm:$0xff] }
  0xf3   : > { %v715_v46 = vpop.f32.mrf.mxu2  ;;  %846 = vmatpush.msrb.mxu1 %v756_v45 }
  0xf4   : > { %v744_v47 = vpop.f32.mrf.mxu3  ;;  %v716_v50 = vadd.f32 %v715_v46, %v424_v20  ;;  %818 = vmatpush.msrb.mxu0 %v751_v42 }
  0xf5   : > { %v745_v51 = vadd.f32 %v744_v47, %v424_v20  ;;  %847 = vmatpush.msrb.mxu1 %v752_v43 }
  0xf6   : > { %v761_v56 = vmax.f32 %v716_v50, 0.0  ;;  %819 = vmatpush.msrb.mxu0 %v747_v52 }
  0xf7   : > { %v762_v57 = vmax.f32 %v745_v51, 0.0  ;;  %848 = vmatpush.msrb.mxu1 %v748_v53  ;;  %1365 = vmatmul.msk.f32.vlgmr.msrb.gmra.mxu0 %vm791_vm1, %v763_v58 }
  0xf8   : > { %874 = vmatpush.msrb.mxu2 %v761_v56  ;;  %1369 = vmatmul.msk.f32.vlgmr.msrb.gmra.mxu1 %vm791_vm1, %v763_v58 }
  0xf9   : > { %903 = vmatpush.msrb.mxu3 %v762_v57 }
  0xfa   : > { %875 = vmatpush.msrb.mxu2 %v757_v61 }
  0xfb   : > { %904 = vmatpush.msrb.mxu3 %v758_v62 }
  0xfc   : > { %876 = vmatpush.msrb.mxu2 %v753_v0  ;;  %v938_v0 = vld [vmem:[%s1914_s5 + $0x10] sm:$0xff] }
  0xfd   : > { %905 = vmatpush.msrb.mxu3 %v754_v1  ;;  %v939_v1 = vld [vmem:[%s1914_s5 + $0x18] sm:$0xff] }
  0xfe   : > { %877 = vmatpush.msrb.mxu2 %v749_v2 }
  0xff   : > { %906 = vmatpush.msrb.mxu3 %v750_v3  ;;  %1373 = vmatmul.msk.f32.vlgmr.msrb.gmra.mxu2 %vm791_vm1, %v763_v58 }
 0x100   : > { %1377 = vmatmul.msk.f32.vlgmr.msrb.gmra.mxu3 %vm791_vm1, %v763_v58  ;;  %1366 = vmatmul.msk.f32.gmra.mxu0 %vm791_vm1, %v764_v4 }
 0x101   : > { %1370 = vmatmul.msk.f32.gmra.mxu1 %vm791_vm1, %v764_v4 }
 0x107   : > { %1374 = vmatmul.msk.f32.gmra.mxu2 %vm791_vm1, %v764_v4 }
 0x108   : > { %1378 = vmatmul.msk.f32.gmra.mxu3 %vm791_vm1, %v764_v4  ;;  %1367 = vmatmul.msk.f32.gmra.mxu0 %vm791_vm1, %v765_v6 }
 0x109   : > { %1371 = vmatmul.msk.f32.gmra.mxu1 %vm791_vm1, %v765_v6 }
 0x10f   : > { %1375 = vmatmul.msk.f32.gmra.mxu2 %vm791_vm1, %v765_v6 }
 0x110   : > { %1379 = vmatmul.msk.f32.gmra.mxu3 %vm791_vm1, %v765_v6  ;;  %1368 = vmatmul.msk.f32.gmra.mxu0 %vm791_vm1, %v766_v8 }
 0x111   : > { %1372 = vmatmul.msk.f32.gmra.mxu1 %vm791_vm1, %v766_v8 }
 0x117   : > { %1376 = vmatmul.msk.f32.gmra.mxu2 %vm791_vm1, %v766_v8 }
 0x118   : > { %1380 = vmatmul.msk.f32.gmra.mxu3 %vm791_vm1, %v766_v8  ;;  %v962_v8 = vpop.permute.xlu2 %961 }
 0x174   : > { %v821_v10 = vpop.f32.mrf.mxu0 }
 0x175   : > { %v850_v11 = vpop.f32.mrf.mxu1  ;;  %v822_v38 = vadd.f32 %v821_v10, %v774_v31 }
 0x176   : > { %v851_v39 = vadd.f32 %v850_v11, %v774_v31  ;;  %v957_v11 = vpop.permute.xlu0 %956 }
 0x177   : > { %v920_v42 = vmax.f32 %v822_v38, 0.0 }
 0x178   : > { %v921_v43 = vmax.f32 %v851_v39, 0.0 }
 0x17d   : > { %v824_v12 = vpop.f32.mrf.mxu0 }
 0x17e   : > { %v853_v13 = vpop.f32.mrf.mxu1  ;;  %v825_v29 = vadd.f32 %v824_v12, %v779_v26 }
 0x17f   : > { %v854_v30 = vadd.f32 %v853_v13, %v779_v26 }
 0x180   : > { %v924_v40 = vmax.f32 %v825_v29, 0.0 }
 0x181   : > { %v925_v41 = vmax.f32 %v854_v30, 0.0 }
 0x182   : > { %v879_v15 = vpop.f32.mrf.mxu2 }
 0x183   : > { %v908_v16 = vpop.f32.mrf.mxu3  ;;  %v880_v55 = vadd.f32 %v879_v15, %v774_v31 }
 0x184   : > { %v909_v56 = vadd.f32 %v908_v16, %v774_v31 }
 0x185   : > { %v827_v17 = vpop.f32.mrf.mxu0  ;;  %v922_v62 = vmax.f32 %v880_v55, 0.0  ;;  %v1113_v55 = vpop.permute.xlu0 %1112 }
 0x186   : > { %v856_v18 = vpop.f32.mrf.mxu1  ;;  %v828_v22 = vadd.f32 %v827_v17, %v784_v21  ;;  %v923_v63 = vmax.f32 %v909_v56, 0.0 }
 0x187   : > { %v857_v23 = vadd.f32 %v856_v18, %v784_v21 }
 0x188   : > { %v928_v32 = vmax.f32 %v828_v22, 0.0 }
 0x189   : > { %v929_v33 = vmax.f32 %v857_v23, 0.0 }
 0x18a   : > { %v882_v19 = vpop.f32.mrf.mxu2 }
 0x18b   : > { %v911_v20 = vpop.f32.mrf.mxu3  ;;  %v883_v51 = vadd.f32 %v882_v19, %v779_v26 }
 0x18c   : > { %v912_v52 = vadd.f32 %v911_v20, %v779_v26 }
 0x18d   : > { %v830_v24 = vpop.f32.mrf.mxu0  ;;  %v926_v60 = vmax.f32 %v883_v51, 0.0 }
 0x18e   : > { %v859_v25 = vpop.f32.mrf.mxu1  ;;  %v831_v27 = vadd.f32 %v830_v24, %v789_v14  ;;  %v927_v61 = vmax.f32 %v912_v52, 0.0 }
 0x18f   : > { %v860_v28 = vadd.f32 %v859_v25, %v789_v14  ;;  %v947_v25 = vpop.permute.xlu2 %946 }
 0x190   : > { %v932_v34 = vmax.f32 %v831_v27, 0.0 }
 0x191   : > { %v933_v35 = vmax.f32 %v860_v28, 0.0 }
 0x192   : > { %v885_v36 = vpop.f32.mrf.mxu2  ;;  %988 = vmatpush.msra.mxu0 %v932_v34  ;;  %v1108_v34 = vld [vmem:[%s1916_s7] sm:$0xff] }
 0x193   : > { %v914_v37 = vpop.f32.mrf.mxu3  ;;  %1017 = vmatpush.msra.mxu1 %v933_v35  ;;  %v886_v47 = vadd.f32 %v885_v36, %v784_v21 }
 0x194   : > { %989 = vmatpush.msra.mxu0 %v928_v32  ;;  %v915_v48 = vadd.f32 %v914_v37, %v784_v21 }
 0x195   : > { %1018 = vmatpush.msra.mxu1 %v929_v33  ;;  %v930_v57 = vmax.f32 %v886_v47, 0.0 }
 0x196   : > { %990 = vmatpush.msra.mxu0 %v924_v40  ;;  %v931_v58 = vmax.f32 %v915_v48, 0.0 }
 0x197   : > { %1019 = vmatpush.msra.mxu1 %v925_v41 }
 0x198   : > { %991 = vmatpush.msra.mxu0 %v920_v42 }
 0x199   : > { %1020 = vmatpush.msra.mxu1 %v921_v43  ;;  %1381 = vmatmul.msk.f32.vlgmr.msra.gmra.mxu0 %vm791_vm1, %v936_v44 }
 0x19a   : > { %v888_v45 = vpop.f32.mrf.mxu2  ;;  %1385 = vmatmul.msk.f32.vlgmr.msra.gmra.mxu1 %vm791_vm1, %v936_v44 }
 0x19b   : > { %v917_v46 = vpop.f32.mrf.mxu3  ;;  %v889_v49 = vadd.f32 %v888_v45, %v789_v14 }
 0x19c   : > { %v918_v50 = vadd.f32 %v917_v46, %v789_v14  ;;  %v952_v14 = vpop.permute.xlu1 %951 }
 0x19d   : > { %v934_v53 = vmax.f32 %v889_v49, 0.0 }
 0x19e   : > { %v935_v54 = vmax.f32 %v918_v50, 0.0 }
 0x19f   : > { %1046 = vmatpush.msra.mxu2 %v934_v53 }
 0x1a0   : > { %1075 = vmatpush.msra.mxu3 %v935_v54 }
 0x1a1   : > { %1047 = vmatpush.msra.mxu2 %v930_v57  ;;  %1382 = vmatmul.msk.f32.gmra.mxu0 %vm791_vm1, %v937_v59 }
 0x1a2   : > { %1076 = vmatpush.msra.mxu3 %v931_v58  ;;  %1386 = vmatmul.msk.f32.gmra.mxu1 %vm791_vm1, %v937_v59 }
 0x1a3   : > { %1048 = vmatpush.msra.mxu2 %v926_v60 }
 0x1a4   : > { %1077 = vmatpush.msra.mxu3 %v927_v61 }
 0x1a5   : > { %1049 = vmatpush.msra.mxu2 %v922_v62 }
 0x1a6   : > { %1078 = vmatpush.msra.mxu3 %v923_v63  ;;  %1389 = vmatmul.msk.f32.vlgmr.msra.gmra.mxu2 %vm791_vm1, %v936_v44 }
 0x1a7   : > { %1393 = vmatmul.msk.f32.vlgmr.msra.gmra.mxu3 %vm791_vm1, %v936_v44 }
 0x1a9   : > { %1383 = vmatmul.msk.f32.gmra.mxu0 %vm791_vm1, %v938_v0 }
 0x1aa   : > { %1387 = vmatmul.msk.f32.gmra.mxu1 %vm791_vm1, %v938_v0 }
 0x1ae   : > { %1390 = vmatmul.msk.f32.gmra.mxu2 %vm791_vm1, %v937_v59 }
 0x1af   : > { %1394 = vmatmul.msk.f32.gmra.mxu3 %vm791_vm1, %v937_v59 }
 0x1b1   : > { %1384 = vmatmul.msk.f32.gmra.mxu0 %vm791_vm1, %v939_v1 }
 0x1b2   : > { %1388 = vmatmul.msk.f32.gmra.mxu1 %vm791_vm1, %v939_v1 }
 0x1b6   : > { %1391 = vmatmul.msk.f32.gmra.mxu2 %vm791_vm1, %v938_v0 }
 0x1b7   : > { %1395 = vmatmul.msk.f32.gmra.mxu3 %vm791_vm1, %v938_v0 }
 0x1be   : > { %1392 = vmatmul.msk.f32.gmra.mxu2 %vm791_vm1, %v939_v1 }
 0x1bf   : > { %1396 = vmatmul.msk.f32.gmra.mxu3 %vm791_vm1, %v939_v1 }
 0x216   : > { %v993_v2 = vpop.f32.mrf.mxu0 }
 0x217   : > { %v1022_v3 = vpop.f32.mrf.mxu1  ;;  %v994_v26 = vadd.f32 %v993_v2, %v947_v25 }
 0x218   : > { %v1023_v27 = vadd.f32 %v1022_v3, %v947_v25 }
 0x219   : > { %v1092_v32 = vmax.f32 %v994_v26, 0.0 }
 0x21a   : > { %v1093_v33 = vmax.f32 %v1023_v27, 0.0 }
 0x21e   : > { %v996_v4 = vpop.f32.mrf.mxu0 }
 0x21f   : > { %v1025_v5 = vpop.f32.mrf.mxu1  ;;  %v997_v21 = vadd.f32 %v996_v4, %v952_v14 }
 0x220   : > { %v1026_v22 = vadd.f32 %v1025_v5, %v952_v14 }
 0x221   : > { %v1096_v30 = vmax.f32 %v997_v21, 0.0 }
 0x222   : > { %v1097_v31 = vmax.f32 %v1026_v22, 0.0 }
 0x226   : > { %v999_v6 = vpop.f32.mrf.mxu0 }
 0x227   : > { %v1028_v7 = vpop.f32.mrf.mxu1  ;;  %v1000_v15 = vadd.f32 %v999_v6, %v957_v11 }
 0x228   : > { %v1029_v16 = vadd.f32 %v1028_v7, %v957_v11 }
 0x229   : > { %v1051_v9 = vpop.f32.mrf.mxu2  ;;  %v1100_v28 = vmax.f32 %v1000_v15, 0.0 }
 0x22a   : > { %v1080_v10 = vpop.f32.mrf.mxu3  ;;  %v1101_v29 = vmax.f32 %v1029_v16, 0.0  ;;  %v1052_v47 = vadd.f32 %v1051_v9, %v947_v25 }
 0x22b   : > { %v1081_v48 = vadd.f32 %v1080_v10, %v947_v25 }
 0x22c   : > { %v1094_v53 = vmax.f32 %v1052_v47, 0.0 }
 0x22d   : > { %v1095_v54 = vmax.f32 %v1081_v48, 0.0 }
 0x22e   : > { %v1002_v12 = vpop.f32.mrf.mxu0 }
 0x22f   : > { %v1031_v13 = vpop.f32.mrf.mxu1  ;;  %v1003_v17 = vadd.f32 %v1002_v12, %v962_v8 }
 0x230   : > { %v1032_v18 = vadd.f32 %v1031_v13, %v962_v8 }
 0x231   : > { %v1054_v19 = vpop.f32.mrf.mxu2  ;;  %v1104_v23 = vmax.f32 %v1003_v17, 0.0 }
 0x232   : > { %v1083_v20 = vpop.f32.mrf.mxu3  ;;  %v1105_v24 = vmax.f32 %v1032_v18, 0.0  ;;  %v1055_v43 = vadd.f32 %v1054_v19, %v952_v14 }
 0x233   : > { %1130 = vmatpush.msrb.mxu0 %v1104_v23  ;;  %v1084_v44 = vadd.f32 %v1083_v20, %v952_v14 }
 0x234   : > { %1150 = vmatpush.msrb.mxu1 %v1105_v24  ;;  %v1098_v51 = vmax.f32 %v1055_v43, 0.0 }
 0x235   : > { %1131 = vmatpush.msrb.mxu0 %v1100_v28  ;;  %v1099_v52 = vmax.f32 %v1084_v44, 0.0 }
 0x236   : > { %1151 = vmatpush.msrb.mxu1 %v1101_v29 }
 0x237   : > { %1132 = vmatpush.msrb.mxu0 %v1096_v30 }
 0x238   : > { %1152 = vmatpush.msrb.mxu1 %v1097_v31 }
 0x239   : > { %v1057_v35 = vpop.f32.mrf.mxu2  ;;  %1133 = vmatpush.msrb.mxu0 %v1092_v32 }
 0x23a   : > { %v1086_v36 = vpop.f32.mrf.mxu3  ;;  %1153 = vmatpush.msrb.mxu1 %v1093_v33  ;;  %1397 = vmatmul.msk.f32.vlgmr.msrb.gmra.mxu0 %vm791_vm1, %v1108_v34  ;;  %v1058_v39 = vadd.f32 %v1057_v35, %v957_v11 }
 0x23b   : > { %1398 = vmatmul.msk.f32.vlgmr.msrb.gmra.mxu1 %vm791_vm1, %v1108_v34  ;;  %v1087_v40 = vadd.f32 %v1086_v36, %v957_v11 }
 0x23c   : > { %v1102_v49 = vmax.f32 %v1058_v39, 0.0 }
 0x23d   : > { %v1103_v50 = vmax.f32 %v1087_v40, 0.0 }
 0x241   : > { %v1060_v37 = vpop.f32.mrf.mxu2 }
 0x242   : > { %v1089_v38 = vpop.f32.mrf.mxu3  ;;  %v1061_v41 = vadd.f32 %v1060_v37, %v962_v8 }
 0x243   : > { %v1090_v42 = vadd.f32 %v1089_v38, %v962_v8 }
 0x244   : > { %v1106_v45 = vmax.f32 %v1061_v41, 0.0 }
 0x245   : > { %v1107_v46 = vmax.f32 %v1090_v42, 0.0 }
 0x246   : > { %1170 = vmatpush.msrb.mxu2 %v1106_v45 }
 0x247   : > { %1190 = vmatpush.msrb.mxu3 %v1107_v46 }
 0x248   : > { %1171 = vmatpush.msrb.mxu2 %v1102_v49 }
 0x249   : > { %1191 = vmatpush.msrb.mxu3 %v1103_v50 }
 0x24a   : > { %1172 = vmatpush.msrb.mxu2 %v1098_v51 }
 0x24b   : > { %1192 = vmatpush.msrb.mxu3 %v1099_v52 }
 0x24c   : > { %1173 = vmatpush.msrb.mxu2 %v1094_v53 }
 0x24d   : > { %1193 = vmatpush.msrb.mxu3 %v1095_v54  ;;  %1399 = vmatmul.msk.f32.vlgmr.msrb.gmra.mxu2 %vm791_vm1, %v1108_v34 }
 0x24e   : > { %1400 = vmatmul.msk.f32.vlgmr.msrb.gmra.mxu3 %vm791_vm1, %v1108_v34 }
 0x2b7   : > { %v1135_v56 = vpop.f32.mrf.mxu0 }
 0x2b8   : > { %v1155_v57 = vpop.f32.mrf.mxu1  ;;  %v1136_v58 = vadd.f32 %v1135_v56, %v1113_v55 }
 0x2b9   : > { %v1156_v59 = vadd.f32 %v1155_v57, %v1113_v55 }
 0x2ba   : > { %1198 = vst [vmem:[%s326_s17] sm:$0xff] %v1136_v58 }
 0x2bb   : > { %1199 = vst [vmem:[%s326_s17 + $0x8] sm:$0xff] %v1156_v59 }
 0x2d0   : > { %v1175_v60 = vpop.f32.mrf.mxu2 }
 0x2d1   : > { %v1195_v61 = vpop.f32.mrf.mxu3  ;;  %v1176_v62 = vadd.f32 %v1175_v60, %v1113_v55 }
 0x2d2   : > { %v1196_v63 = vadd.f32 %v1195_v61, %v1113_v55 }
 0x2d3   : > { %1200 = vst [vmem:[%s326_s17 + $0x10] sm:$0xff] %v1176_v62 }
 0x2d4   : > { %1201 = vst [vmem:[%s326_s17 + $0x18] sm:$0xff] %v1196_v63 }
 0x2d5   : > { %1477 = shalt.err (!%p1474_p3)
}
 0x2d6   : > { %1407 = dma.vmem_to_hbm [thread:$0]  (%p1603_p5), %s1217_s26, 512, %s1219_s27, %s1203_s28  }
 0x2d7 PF: > { %p1413_p4 = scmp.ge.s32.totalorder %s1512_s12, 2  ;;  %s1230_s16 = sand.u32 1, %s1500_s30  }
 0x2d8   : > { %s1231_s17 = scalar_lea.sflag [#allocation3], %s1230_s16 }
 0x2d9   : > { %p1410_p7 = pnand %p1413_p4, %p1607_p6 }
 0x2db   : > { %p1411_p8 = pneg %p1410_p7 }
 0x2dd   : > { %1495 = dma.done.wait (%p1411_p8), %s1231_s17, 512  }
 0x2de   : > { %1497 = vsyncadd (%p1411_p8), %s1231_s17, 4294966784  ;;  %p19_p9 = scmp.ge.s32.totalorder %s1590_s15, 4   ;;  %s1921_s30 = smov %s1504_s10 }
 0x2df   : > { %s1922_s10 = smov %s1508_s11  ;;  %s1923_s11 = smov %s1601_s18 }
 0x2e0   : > { %s1924_s12 = smov %s1590_s15  ;;  %21 = sbr.rel (!%p19_p9) target bundleno = 3 (0x3), region = 91 }
 0x2e5   :  { %1237 = vsyncpa [#allocation3], 1 }
 0x2e6   :  { %1239 = vsyncpa [#allocation3 + $0x1], 1 }

</bundles_post_ra>
